<compile_context>
chip_gen: v7x
topology: tpu7x:2x2x1
jax: 0.10.0
libtpu: 0.0.40
codegen_flags: <defaults>
</compile_context>

<pallas_src>
import functools
import math

import jax
import jax.numpy as jnp
from jax.experimental import pallas as pl
from jax.experimental.pallas import tpu as pltpu

EPS = 1e-6


def _entropy_partial_kernel(x_ref, o_ref, *, rows_total, row_tile, lanes):
    """Per-block partial sum of x*log(x+eps), folded to an (8, lanes) f32 tile."""
    i = pl.program_id(0)

    def partial(x):
        t = x * jnp.log(x + EPS)                                  # (row_tile, lanes) f32
        # Fold the sublane-group axis: pure VPU adds, no cross-lane/XLU work.
        return t.reshape(row_tile // 8, 8, lanes).sum(axis=0)     # (8, lanes)

    if rows_total % row_tile != 0:
        last = pl.num_programs(0) - 1

        @pl.when(i != last)
        def _steady():
            o_ref[...] = partial(x_ref[...].astype(jnp.float32))

        @pl.when(i == last)
        def _tail():
            # Only the final (partial) block pays for the mask. Mask BEFORE the
            # log so Pallas block-padding garbage can't inject NaN/Inf.
            x = x_ref[...].astype(jnp.float32)
            row_ids = jax.lax.broadcasted_iota(jnp.int32, x.shape, 0)
            x = jnp.where(row_ids < (rows_total % row_tile), x, 0.0)
            o_ref[...] = partial(x)
    else:
        o_ref[...] = partial(x_ref[...].astype(jnp.float32))


def _vmem_budget_bytes():
    """Per-generation scoped VMEM budget (v7x: 64 MiB physical, v5e/v6e: 128 MiB)."""
    cap = None
    try:
        cap = getattr(pltpu.get_tpu_info(), "vmem_capacity_bytes", None)
    except Exception:
        cap = None
    if not cap:
        cap = 64 * 1024 * 1024  # conservative fallback (v7x per-TC physical)
    return int(min(cap * 3 // 4, 96 * 1024 * 1024))


def _pick_row_tile(rows_total, lanes, itemsize, vmem_limit_bytes):
    """Rows per grid step: ~8 MiB of input per block, bounded by the VMEM budget
    (2x double-buffered input blocks + f32 elementwise temporaries + headroom)."""
    target_bytes = 8 * 1024 * 1024
    by_vmem = vmem_limit_bytes // 5
    block_bytes = max(min(target_bytes, by_vmem), 8 * lanes * itemsize)
    rows = max(8, (block_bytes // (lanes * itemsize)) // 8 * 8)
    rows_cap = max(8, (rows_total // 8) * 8)  # block row dim must not exceed the array
    return int(min(rows, rows_cap))


def entropy_loss(ypred, reduction="batchmean", row_tile=None, lanes=None):
    """Pallas implementation of EntropyLoss.forward (mean-style reductions).

    ypred: [..., C] float array of probabilities. bf16/f32 accepted.
    """
    assert reduction in ("batchmean", "mean"), "only mean-style reductions implemented"
    # TODO(synk): the non-mean reduction (per-row entropy output) is not implemented
    # in the Pallas path.
    n = math.prod(ypred.shape)
    denom = n // ypred.shape[-1]          # number of rows the entropy is averaged over
    itemsize = ypred.dtype.itemsize

    # ---- lane-dense flat view -------------------------------------------------
    if lanes is None:
        lanes = 128
        for cand in (512, 256, 128):
            if n % cand == 0 and n // cand >= 8:
                lanes = cand
                break
    flat = ypred.reshape(-1)
    rows_total = max(8, pl.cdiv(n, lanes))            # at least one full sublane tile
    n_padded = rows_total * lanes
    if n_padded != n:
        flat = jnp.pad(flat, (0, n_padded - n))       # zeros: 0 * log(0 + eps) == 0
    x2d = flat.reshape(rows_total, lanes)

    # ---- tiling ---------------------------------------------------------------
    vmem_limit = _vmem_budget_bytes()
    if row_tile is None:
        row_tile = _pick_row_tile(rows_total, lanes, itemsize, vmem_limit)
    assert row_tile % 8 == 0 and row_tile >= 8
    assert row_tile <= max(8, (rows_total // 8) * 8)

    num_blocks = pl.cdiv(rows_total, row_tile)
    kernel = functools.partial(_entropy_partial_kernel, rows_total=rows_total,
                               row_tile=row_tile, lanes=lanes)

    partials = pl.pallas_call(
        kernel,
        out_shape=jax.ShapeDtypeStruct((num_blocks * 8, lanes), jnp.float32),
        grid_spec=pltpu.PrefetchScalarGridSpec(
            num_scalar_prefetch=0,
            grid=(num_blocks,),
            in_specs=[pl.BlockSpec((row_tile, lanes), lambda i: (i, 0))],
            out_specs=pl.BlockSpec((8, lanes), lambda i: (i, 0)),
        ),
        compiler_params=pltpu.CompilerParams(
            # Independent per-block partial sums: both TensorCores usable on v7x.
            dimension_semantics=("parallel",),
            vmem_limit_bytes=vmem_limit,
        ),
        cost_estimate=pl.CostEstimate(
            flops=3 * n_padded,
            transcendentals=n_padded,
            bytes_accessed=n_padded * itemsize + num_blocks * 8 * lanes * 4,
        ),
    )(x2d)

    # Tiny finalize in XLA: global sum of lane-dense partials, negate, mean.
    return -jnp.sum(partials) / jnp.float32(denom)


def entropy_loss_ref(ypred):
    p = ypred.astype(jnp.float32)
    ent = -jnp.sum(p * jnp.log(p + EPS), axis=-1)
    return jnp.mean(ent)


if __name__ == "__main__":
    key = jax.random.PRNGKey(0)

    # Test 1: clean shape -> lanes=256, single full block, unmasked path.
    B, C = 16, 128
    ypred = jax.nn.softmax(jax.random.normal(key, (B, C), dtype=jnp.float32), axis=-1)
    loss = jax.block_until_ready(entropy_loss(ypred))
    ref = jax.block_until_ready(entropy_loss_ref(ypred))
    assert jnp.allclose(loss, ref, rtol=1e-5, atol=1e-5), (loss, ref)

    # Test 2: narrow C -> lanes=128, 10 rows, 2 grid steps ("parallel" per-block
    # partials) with a masked partial last block.
    B2, C2 = 20, 64
    ypred2 = jax.nn.softmax(
        jax.random.normal(jax.random.fold_in(key, 1), (B2, C2), dtype=jnp.float32),
        axis=-1)
    loss2 = jax.block_until_ready(entropy_loss(ypred2))
    ref2 = jax.block_until_ready(entropy_loss_ref(ypred2))
    assert jnp.allclose(loss2, ref2, rtol=1e-5, atol=1e-5), (loss2, ref2)

    # Test 3: bf16 input with a channel count that forces the flat zero-pad path.
    B3, C3 = 12, 100
    ypred3 = jax.nn.softmax(
        jax.random.normal(jax.random.fold_in(key, 2), (B3, C3), dtype=jnp.float32),
        axis=-1).astype(jnp.bfloat16)
    loss3 = jax.block_until_ready(entropy_loss(ypred3))
    ref3 = jax.block_until_ready(entropy_loss_ref(ypred3))
    assert jnp.allclose(loss3, ref3, rtol=1e-4, atol=1e-4), (loss3, ref3)

    print("KERNEL_OK")
</pallas_src>

<mosaic_0001>
module attributes {stable_mosaic.version = 11 : i64} {
  func.func @_entropy_partial_kernel(%arg0: i32, %arg1: memref<8x256xf32, #tpu.memory_space<vmem>>, %arg2: memref<8x256xf32, #tpu.memory_space<vmem>>) attributes {dimension_semantics = [#tpu.dimension_semantics<parallel>], iteration_bounds = array<i64: 1>, scalar_prefetch = 0 : i64, scratch_operands = 0 : i64, tpu.core_type = #tpu.core_type<tc>, window_params = [{transform_indices = @transform_0, window_bounds = array<i64: 8, 256>}, {transform_indices = @transform_1, window_bounds = array<i64: 8, 256>}]} {
    %c0 = arith.constant 0 : index
    %c0_0 = arith.constant 0 : index
    %0 = vector.load %arg1[%c0, %c0_0] : memref<8x256xf32, #tpu.memory_space<vmem>>, vector<8x256xf32>
    %cst = arith.constant 9.99999997E-7 : f32
    %1 = vector.broadcast %cst : f32 to vector<8x256xf32>
    %2 = arith.addf %0, %1 : vector<8x256xf32>
    %3 = math.log %2 : vector<8x256xf32>
    %4 = arith.mulf %0, %3 : vector<8x256xf32>
    %5 = vector.shape_cast %4 : vector<8x256xf32> to vector<1x8x256xf32>
    %cst_1 = arith.constant dense<0.000000e+00> : vector<8x256xf32>
    %6 = vector.multi_reduction <add>, %5, %cst_1 [0] : vector<1x8x256xf32> to vector<8x256xf32>
    %c0_2 = arith.constant 0 : index
    %c0_3 = arith.constant 0 : index
    %7 = vector.load %arg2[%c0_2, %c0_3] : memref<8x256xf32, #tpu.memory_space<vmem>>, vector<8x256xf32>
    tpu.vector_store %arg2[%c0_2, %c0_3], %6 {strides = array<i32>} : memref<8x256xf32, #tpu.memory_space<vmem>>, vector<8x256xf32>,
    return
  }
  func.func @transform_0(%arg0: i32) -> (i32, i32) {
    %c0_i32 = arith.constant 0 : i32
    %c0_i32_0 = arith.constant 0 : i32
    return %arg0, %c0_i32 : i32, i32
  }
  func.func @transform_1(%arg0: i32) -> (i32, i32) {
    %c0_i32 = arith.constant 0 : i32
    %c0_i32_0 = arith.constant 0 : i32
    return %arg0, %c0_i32 : i32, i32
  }
}

</mosaic_0001>

<bundles_post_ra>
// kernel: tpu_custom_call.1
= control target key start
LH: loop header
LB: loop body
LE: loop exit
PB: predicated region body
PF: predicated region fallthrough
CT: control target
= control target key end

     0   :  { %6 = vsyncpa [#allocation3], 0  ;;  %s140_s0 = inlined_call_operand.hbm [shape: f32[8,256], index: 0, kind: input, shape index: {}]   ;;  %s141_s1 = inlined_call_operand.hbm [shape: f32[8,256], index: 1, kind: output, shape index: {}]  }
   0x1   :  { %7 = vsyncpa [#allocation4], 0  ;;  %s104_s6 = smov [#allocation2]   ;;  %s56_s10 = scalar_lea.hbm %s140_s0, 256 }
   0x2   :  { %s14_s7 = sshll.u32 %s104_s6, 4  ;;  %p57_p0 = scmp.ne.s32.totalorder %s140_s0, %s56_s10  ;;  %s15_s7 = int_to_ptr.vmem [resolvable:$true] %s14_s7 }
   0x3   :  { %p60_p1 = scmp.lt.u32.totalorder %s56_s10, %s140_s0 }
   0x5   :  { %p62_p2 = pnand %p60_p1, %p57_p0 }
   0x7   :  { %65 = shalt.err (!%p62_p2)
}
   0x8   :  { %s66_s15 = scalar_lea.vmem %s15_s7, 256  ;;  %p71_p4 = scmp.lt.s32.totalorder %s15_s7, %s15_s7 }
   0x9   :  { %p67_p3 = scmp.ne.s32.totalorder %s15_s7, %s66_s15  ;;  %p72_p5 = scmp.lt.s32.totalorder %s66_s15, %s66_s15 }
   0xb   :  { %p73_p6 = por %p72_p5, %p71_p4 }
   0xd   :  { %p74_p7 = pnand %p73_p6, %p67_p3 }
   0xf   :  { %77 = shalt.err (!%p74_p7)
}
  0x10   :  { %17 = dma.hbm_to_vmem [thread:$0]  %s140_s0, 256, %s15_s7, [#allocation3]  }
  0x11   :  { %100 = dma.done.wait [#allocation3], 256  }
  0x12   :  { %101 = vsyncadd [#allocation3], 4294967040  ;;  %v21_v0 = vld [vmem:[#allocation2] sm:$0xff]  ;;  %v22_v1 = vld [vmem:[#allocation2 + $0x8] sm:$0xff]  ;;  %s105_s18 = smov [#allocation5]  }
  0x13   :  { %v23_v2 = vadd.f32 1e-06, %v21_v0  ;;  %v24_v3 = vadd.f32 1e-06, %v22_v1  ;;  %s41_s19 = sshll.u32 %s105_s18, 4  ;;  %s42_s19 = int_to_ptr.vmem [resolvable:$true] %s41_s19 }
  0x14   :  { %s78_s0 = scalar_lea.vmem %s42_s19, 256  ;;  %p83_p9 = scmp.lt.s32.totalorder %s42_s19, %s42_s19 }
  0x15   :  { %52 = vlog2.f32 %v23_v2  ;;  %p79_p8 = scmp.ne.s32.totalorder %s42_s19, %s78_s0  ;;  %p84_p10 = scmp.lt.s32.totalorder %s78_s0, %s78_s0 }
  0x16   :  { %54 = vlog2.f32 %v24_v3 }
  0x17   :  { %p85_p11 = por %p84_p10, %p83_p9 }
  0x19   :  { %p86_p12 = pnand %p85_p11, %p79_p8 }
  0x1f   :  { %v53_v4 = vpop.eup %52 }
  0x20   :  { %v55_v5 = vpop.eup %54  ;;  %v26_v6 = vmul.f32 0.6931472, %v53_v4 }
  0x21   :  { %v28_v7 = vmul.f32 0.6931472, %v55_v5 }
  0x22   :  { %v29_v8 = vmul.f32 %v26_v6, %v21_v0 }
  0x23   :  { %v30_v9 = vmul.f32 %v28_v7, %v22_v1 }
  0x24   :  { %33 = vst [vmem:[#allocation5] sm:$0xff] %v29_v8 }
  0x25   :  { %34 = vst [vmem:[#allocation5 + $0x8] sm:$0xff] %v30_v9 }
  0x26   :  { %89 = shalt.err (!%p86_p12)
}
  0x27   :  { %s90_s22 = scalar_lea.hbm %s141_s1, 256 }
  0x28   :  { %p91_p13 = scmp.ne.s32.totalorder %s141_s1, %s90_s22  ;;  %p94_p0 = scmp.lt.u32.totalorder %s90_s22, %s141_s1 }
  0x2a   :  { %p96_p1 = pnand %p94_p0, %p91_p13 }
  0x2c   :  { %99 = shalt.err (!%p96_p1)
}
  0x2d   :  { %44 = dma.vmem_to_hbm [thread:$0]  %s42_s19, 256, %s141_s1, [#allocation4]  }
  0x2e   :  { %102 = dma.done.wait [#allocation4], 256  }
  0x2f   :  { %103 = vsyncadd [#allocation4], 4294967040 }
  0x30   :  { %48 = vsyncpa [#allocation3], 1 }
  0x31   :  { %49 = vsyncpa [#allocation4], 1 }

</bundles_post_ra>
